<compile_context>
chip_gen: v6e
topology: v6e:2x2x1
jax: 0.10.0
libtpu: 0.0.40
codegen_flags: <defaults>
</compile_context>

<pallas_src>
import math

import jax
import jax.numpy as jnp
from jax.experimental import pallas as pl
from jax.experimental.pallas import tpu as pltpu

_LANE = 128
_MAX_BLOCK_BYTES = 2 * 1024 * 1024  # per-block cap; double-buffered in+out stays tiny vs VMEM


def _copy_kernel(x_ref, o_ref):
    o_ref[...] = x_ref[...]


def _resolve_tail_shape(tail_shape, numel):
    """Resolve a single -1 the same way torch.Tensor.view does."""
    tail = list(tail_shape)
    if tail.count(-1) > 1:
        raise ValueError("only one dimension can be inferred")
    if -1 in tail:
        known = 1
        for d in tail:
            if d != -1:
                known *= d
        tail[tail.index(-1)] = numel // known
    if math.prod(tail) != numel:
        raise ValueError(f"shape {tuple(tail_shape)} is invalid for {numel} elements")
    return tuple(tail)


def _num_lane_chunks(batch, numel, itemsize):
    """How many lane-chunks to split the flattened copy into (build-time ints)."""
    if numel % _LANE != 0:
        return 1  # fall back to a single full-array block (always layout-legal)
    # Keep >=2 chunks (v7x has 2 TensorCores) and cap per-block bytes.
    n = max(2, pl.cdiv(batch * numel * itemsize, _MAX_BLOCK_BYTES))
    lanes = numel // _LANE
    n = min(n, lanes)
    while lanes % n != 0:  # chunk must stay a multiple of 128 lanes
        n -= 1
    return n


def pallas_view(x, *shape):
    """Equivalent of `x.view(x.shape[0], *shape)` for a contiguous tensor."""
    batch = x.shape[0]
    numel = math.prod(x.shape[1:]) if x.ndim > 1 else 1
    tail = _resolve_tail_shape(shape, numel)

    # Contiguous row-major flatten: metadata-only in XLA, identical memory
    # order to torch's .view on a contiguous tensor.
    x2 = jnp.reshape(x, (batch, numel))

    n_chunks = _num_lane_chunks(batch, numel, x.dtype.itemsize)
    if n_chunks == 1:
        y = pl.pallas_call(
            _copy_kernel,
            out_shape=jax.ShapeDtypeStruct((batch, numel), x.dtype),
            in_specs=[pl.BlockSpec(memory_space=pltpu.MemorySpace.VMEM)],
            out_specs=pl.BlockSpec(memory_space=pltpu.MemorySpace.VMEM),
        )(x2)
    else:
        chunk = numel // n_chunks
        y = pl.pallas_call(
            _copy_kernel,
            out_shape=jax.ShapeDtypeStruct((batch, numel), x.dtype),
            grid=(n_chunks,),
            in_specs=[pl.BlockSpec((batch, chunk), lambda i: (0, i))],
            out_specs=pl.BlockSpec((batch, chunk), lambda i: (0, i)),
            compiler_params=pltpu.CompilerParams(
                dimension_semantics=("parallel",)),
        )(x2)

    # Final shape change is pure metadata (row-major), zero-cost in XLA.
    return jnp.reshape(y, (batch,) + tail)


if __name__ == "__main__":
    key = jax.random.PRNGKey(0)
    x = jax.random.normal(key, (2, 4, 16, 16), jnp.float32)  # NCHW, like PyTorch

    # View(-1): flatten all non-batch dims (as used before the classifier in
    # ResNet_pre_activation.py).
    flatten = jax.jit(lambda t: pallas_view(t, -1))
    out_flat = flatten(x)
    jax.block_until_ready(out_flat)
    assert out_flat.shape == (2, 4 * 16 * 16)
    assert bool(jnp.array_equal(out_flat, jnp.reshape(x, (2, -1))))

    # View(64, 16): arbitrary multi-dim target shape.
    regroup = jax.jit(lambda t: pallas_view(t, 64, 16))
    out_rg = regroup(x)
    jax.block_until_ready(out_rg)
    assert out_rg.shape == (2, 64, 16)
    assert bool(jnp.array_equal(out_rg, jnp.reshape(x, (2, 64, 16))))

    print("KERNEL_OK")
</pallas_src>

<mosaic_0001>
module attributes {stable_mosaic.version = 11 : i64} {
  func.func @_copy_kernel(%arg0: i32, %arg1: memref<2x512xf32, #tpu.memory_space<vmem>>, %arg2: memref<2x512xf32, #tpu.memory_space<vmem>>) attributes {dimension_semantics = [#tpu.dimension_semantics<parallel>], iteration_bounds = array<i64: 2>, scalar_prefetch = 0 : i64, scratch_operands = 0 : i64, tpu.core_type = #tpu.core_type<tc>, window_params = [{transform_indices = @transform_0, window_bounds = array<i64: 2, 512>}, {transform_indices = @transform_1, window_bounds = array<i64: 2, 512>}]} {
    %c0 = arith.constant 0 : index
    %c0_0 = arith.constant 0 : index
    %0 = vector.load %arg1[%c0, %c0_0] : memref<2x512xf32, #tpu.memory_space<vmem>>, vector<2x512xf32>
    %c0_1 = arith.constant 0 : index
    %c0_2 = arith.constant 0 : index
    %1 = vector.load %arg2[%c0_1, %c0_2] : memref<2x512xf32, #tpu.memory_space<vmem>>, vector<2x512xf32>
    tpu.vector_store %arg2[%c0_1, %c0_2], %0 {strides = array<i32>} : memref<2x512xf32, #tpu.memory_space<vmem>>, vector<2x512xf32>,
    return
  }
  func.func @transform_0(%arg0: i32) -> (i32, i32) {
    %c0_i32 = arith.constant 0 : i32
    %c0_i32_0 = arith.constant 0 : i32
    return %c0_i32, %arg0 : i32, i32
  }
  func.func @transform_1(%arg0: i32) -> (i32, i32) {
    %c0_i32 = arith.constant 0 : i32
    %c0_i32_0 = arith.constant 0 : i32
    return %c0_i32, %arg0 : i32, i32
  }
}

</mosaic_0001>

<bundles_post_ra>
// kernel: _lambda_.1
= control target key start
LH: loop header
LB: loop body
LE: loop exit
PB: predicated region body
PF: predicated region fallthrough
CT: control target
= control target key end

     0   :  { %6 = vsyncpa [#allocation3], 0  ;;  %s411_s0 = inlined_call_operand.vmem [shape: f32[2,1024], index: 0, kind: input, shape index: {}]   ;;  %s412_s1 = inlined_call_operand.hbm [shape: f32[2,1024], index: 1, kind: output, shape index: {}]  }
   0x1   :  { %8 = vsyncpa [#allocation3 + $0x1], 0  ;;  %s319_s6 = smov 0   ;;  %s321_s7 = smov 0  }
   0x2   :  { %s323_s8 = smov 0   ;;  %s325_s9 = smov 0  }
   0x3 LB: > { %s340_s10 = sadd.s32 4294967295, %s306_s9   ;;  %s194_s11 = sadd.s32 4294967294, %s306_s9   ;;  %s306_s9 = sphi %s325_s9, %s418_s9   ;;  %s302_s8 = sphi %s323_s8, %s417_s8   ;;  %s298_s7 = sphi %s321_s7, %s416_s7   ;;  %s294_s6 = sphi %s319_s6, %s415_s6  }
   0x4   : > { %s344_s12 = sadd.s32 1, %s306_s9   ;;  %s47_s13 = sadd.s32 1, %s302_s8 }
   0x5   : > { %s44_s14 = ssub.s32 %s306_s9, %s344_s12  ;;  %p57_p0 = scmp.ne.s32.totalorder %s302_s8, %s298_s7 }
   0x6   : > { %p45_p1 = scmp.eq.s32.totalorder %s44_s14, 0  ;;  %p58_p2 = scmp.eq.s32.totalorder %s340_s10, 1 }
   0x7   : > { %p63_p3 = scmp.ne.s32.totalorder %s298_s7, %s294_s6  ;;  %p64_p4 = scmp.eq.s32.totalorder %s194_s11, 1 }
   0x8   : > { %s355_s15 = scalar_select %p45_p1, %s302_s8, %s47_s13  }
   0x9   : > { %p357_p5 = por %p58_p2, %p57_p0  ;;  %p361_p6 = por %p64_p4, %p63_p3 }
   0xa   : > { %p197_p7 = scmp.ge.s32.totalorder %s306_s9, 1  ;;  %p91_p8 = scmp.lt.s32.totalorder %s306_s9, 3 }
   0xc   : > { %p92_p9 = pnand %p197_p7, %p91_p8 }
   0xd   : > { %s108_s18 = sand.u32 (!%p92_p9), 1, %s298_s7   ;;  %s199_s19 = sshll.u32 (!%p92_p9), %s340_s10, 2 }
   0xe   : > { %95 = sbr.rel (%p92_p9) target bundleno = 41 (0x29), region = 24  ;;  %s198_s20 = sshll.u32 (!%p92_p9), %s108_s18, 3 }
   0xf   : > { %p112_p10 = scmp.lt.s32.totalorder (!%p92_p9), %s199_s19, 7  ;;  %s110_s21 = scalar_lea.vmem (!%p92_p9), [#allocation2], %s198_s20 }
  0x10   : > { %s135_s22 = sshll.u32 (!%p92_p9), %s110_s21, 4  ;;  %s206_s23 = sshll.u32 (!%p92_p9), %s340_s10, 7  ;;  %s370_s22 = int_to_ptr.vmem [resolvable:$true] %s135_s22 }
  0x11   : > { %s133_s30 = scalar_lea.hbm (!%p92_p9), %s412_s1, %s206_s23  ;;  %s121_s2 = scalar_lea.sflag (!%p92_p9), [#allocation3], %s108_s18 }
  0x12   : > { %s246_s3 = scalar_lea.vmem (!%p92_p9), %s370_s22, 128  ;;  %s308_s4 = smov (!%p92_p9), [#allocation2]  }
  0x13   : > { %s420_s19 = smov (!%p112_p10, %s199_s19), 7  ;;  %p247_p11 = scmp.ne.s32.totalorder %s370_s22, %s246_s3 }
  0x14   : > { %s200_s24 = sshll.u32 %s420_s19, 1  ;;  %s250_s5 = sshll.u32 %s308_s4, 4  ;;  %s251_s5 = int_to_ptr.vmem [resolvable:$false] %s250_s5 }
  0x15   : > { %s115_s27 = scalar_lea.vmem %s411_s0, %s200_s24  ;;  %p248_p12 = pnand %p247_p11, %p357_p5 }
  0x16   : > { %v118_v0 = vld [vmem:[%s115_s27] sm:$0xff]  ;;  %s252_s10 = scalar_lea.vmem %s251_s5, 256  ;;  %p253_p0 = scmp.lt.s32.totalorder %s370_s22, %s251_s5 }
  0x17   : > { %119 = vst [vmem:[%s110_s21] sm:$0xff] %v118_v0  ;;  %p249_p13 = pneg %p248_p12  ;;  %p254_p1 = scmp.lt.s32.totalorder %s252_s10, %s246_s3 }
  0x19   : > { %p255_p2 = por %p254_p1, %p253_p0 }
  0x1b   : > { %p256_p3 = pnand %p255_p2, %p249_p13 }
  0x1d   : > { %259 = shalt.err (!%p256_p3)
}
  0x1e   : > { %s260_s11 = scalar_lea.hbm %s133_s30, 128  ;;  %s264_s18 = scalar_lea.hbm %s412_s1, 256 }
  0x1f   : > { %p261_p4 = scmp.ne.s32.totalorder %s133_s30, %s260_s11  ;;  %p265_p9 = scmp.lt.s32.totalorder %s133_s30, %s412_s1 }
  0x20   : > { %p266_p10 = scmp.lt.s32.totalorder %s264_s18, %s260_s11 }
  0x21   : > { %p262_p7 = pnand %p261_p4, %p357_p5 }
  0x22   : > { %p267_p11 = por %p266_p10, %p265_p9 }
  0x23   : > { %p263_p8 = pneg %p262_p7 }
  0x25   : > { %p268_p12 = pnand %p267_p11, %p263_p8 }
  0x27   : > { %271 = shalt.err (!%p268_p12)
}
  0x28   : > { %207 = dma.vmem_to_hbm [thread:$0]  (%p357_p5), %s370_s22, 128, %s133_s30, %s121_s2  }
  0x29 PF: > { %p213_p13 = scmp.ge.s32.totalorder %s306_s9, 2  ;;  %s147_s21 = sand.u32 1, %s294_s6  }
  0x2a   : > { %s148_s23 = scalar_lea.sflag [#allocation3], %s147_s21 }
  0x2b   : > { %p210_p0 = pnand %p213_p13, %p361_p6 }
  0x2d   : > { %p211_p1 = pneg %p210_p0 }
  0x2f   : > { %289 = dma.done.wait (%p211_p1), %s148_s23, 128  }
  0x30   : > { %291 = vsyncadd (%p211_p1), %s148_s23, 4294967168  ;;  %p11_p2 = scmp.ge.s32.totalorder %s344_s12, 4   ;;  %s415_s6 = smov %s298_s7 }
  0x31   : > { %s416_s7 = smov %s302_s8  ;;  %s417_s8 = smov %s355_s15 }
  0x32   : > { %s418_s9 = smov %s344_s12  ;;  %13 = sbr.rel (!%p11_p2) target bundleno = 3 (0x3), region = 59 }
  0x37   :  { %153 = vsyncpa [#allocation3], 1 }
  0x38   :  { %155 = vsyncpa [#allocation3 + $0x1], 1 }

</bundles_post_ra>
